<compile_context>
chip_gen: v7x
topology: tpu7x:2x2x1
jax: 0.10.0
libtpu: 0.0.40
codegen_flags: <defaults>
</compile_context>

<pallas_src>
import functools
import math

import jax
import jax.numpy as jnp
from jax.experimental import pallas as pl
from jax.experimental.pallas import tpu as pltpu

NUM_HEADS = 4
LN_EPS = 1e-5  # PyTorch nn.LayerNorm default eps


def _layernorm(z, gamma, beta):
    # One-pass biased variance: var = E[z^2] - mean^2 (matches PyTorch eval LayerNorm).
    mean = jnp.mean(z, axis=-1, keepdims=True)
    mean_sq = jnp.mean(z * z, axis=-1, keepdims=True)
    var = mean_sq - mean * mean
    return (z - mean) * jax.lax.rsqrt(var + LN_EPS) * gamma + beta


def encoder_block_kernel(x_ref, wh_ref, wffn_ref, vec_ref, out_ref, *,
                         num_heads, hidden, ffn_hidden, compute_dtype):
    S = x_ref.shape[0]
    Hin = x_ref.shape[1]
    H, F, NH = hidden, ffn_hidden, num_heads
    hd = H // NH
    cdt = compute_dtype                      # MXU operand dtype (bf16 by default)

    x_aug = x_ref[...]                       # (S, Hin) f32; col H == 1.0, cols > H are 0
    x = x_aug[:, :H]                         # residual stream, f32

    w_heads = wh_ref[...]                    # (4*NH, Hin, hd): [Wq_h | Wk_h | Wv_h | Wo_h^T]

    # ---- fused per-head Q/K/V projection (bias folded via the ones column) ----
    xb = jnp.broadcast_to(x_aug.astype(cdt)[None], (3 * NH, S, Hin))
    qkv = jnp.einsum('hri,hio->hro', xb, w_heads[:3 * NH],
                     preferred_element_type=jnp.float32)        # (3*NH, S, hd) f32
    q, k, v = qkv[:NH], qkv[NH:2 * NH], qkv[2 * NH:]

    # ---- scaled dot-product attention, heads as the single batch dim ----
    s = jnp.einsum('hqd,hkd->hqk', q.astype(cdt), k.astype(cdt),
                   preferred_element_type=jnp.float32) * (1.0 / math.sqrt(hd))
    s = s - jnp.max(s, axis=-1, keepdims=True)
    p = jnp.exp(s)
    denom = jnp.sum(p, axis=-1, keepdims=True)
    r = pl.reciprocal(denom, approx=True)                        # EUP vrcp
    r = r * (2.0 - denom * r)                                    # one Newton step
    p = p * r
    ctx = jnp.einsum('hqk,hkd->hqd', p.astype(cdt), v.astype(cdt),
                     preferred_element_type=jnp.float32)         # (NH, S, hd) f32

    # ---- output projection folded over heads (no lane-concat un-fold) ----
    wot = w_heads[3 * NH:, :H, :]                                # (NH, H, hd) == Wo_h^T
    partial = jnp.einsum('hrd,hod->hro', ctx.astype(cdt), wot,
                         preferred_element_type=jnp.float32)     # (NH, S, H) f32
    attn = partial[0]
    for h in range(1, NH):                                       # static unroll, major-axis adds
        attn = attn + partial[h]

    # packed parameter vectors (f32)
    bo = vec_ref[0:1, 0:H]
    g1 = vec_ref[0:1, H:2 * H]
    be1 = vec_ref[0:1, 2 * H:3 * H]
    b2 = vec_ref[0:1, 3 * H:4 * H]
    g2 = vec_ref[1:2, 0:H]
    be2 = vec_ref[1:2, H:2 * H]
    b1 = vec_ref[1:2, 2 * H:2 * H + F]

    # ---- AddNorm 1 (dropout = identity) ----
    y = _layernorm(attn + bo + x, g1, be1)

    # ---- position-wise FFN ([W1 | W2^T] lane-dense slab) ----
    w1 = wffn_ref[:, :F]                                         # (H, F)
    w2t = wffn_ref[:, F:]                                        # (H, F) == W2^T
    hid = jnp.einsum('rh,hf->rf', y.astype(cdt), w1,
                     preferred_element_type=jnp.float32) + b1
    hid = jnp.maximum(hid, 0.0)
    f = jnp.einsum('rf,of->ro', hid.astype(cdt), w2t,
                   preferred_element_type=jnp.float32) + b2

    # ---- AddNorm 2 ----
    out_ref[...] = _layernorm(f + y, g2, be2)


def pack_params(params, compute_dtype=jnp.bfloat16):
    """Host-side packing into 3 slabs (fewer DMA streams, lane-dense weight tiles)."""
    (Wq, bq, Wk, bk, Wv, bv, Wo, bo, g1, be1, W1, b1, W2, b2, g2, be2) = params
    H = Wq.shape[0]
    F = W1.shape[1]
    hd = H // NUM_HEADS
    Hin = ((H + 1 + 7) // 8) * 8          # input dim + bias row, padded to sublane multiple
    pad = Hin - (H + 1)

    def qkv_slot(W, b, h):
        cols = slice(h * hd, (h + 1) * hd)
        return jnp.concatenate(
            [W[:, cols], b[:, cols], jnp.zeros((pad, hd), jnp.float32)], axis=0)

    def wo_slot(h):
        rows = slice(h * hd, (h + 1) * hd)
        return jnp.concatenate(
            [Wo[rows, :].T, jnp.zeros((Hin - H, hd), jnp.float32)], axis=0)

    slots = ([qkv_slot(Wq, bq, h) for h in range(NUM_HEADS)]
             + [qkv_slot(Wk, bk, h) for h in range(NUM_HEADS)]
             + [qkv_slot(Wv, bv, h) for h in range(NUM_HEADS)]
             + [wo_slot(h) for h in range(NUM_HEADS)])
    w_heads = jnp.stack(slots, axis=0).astype(compute_dtype)     # (4*NH, Hin, hd)

    w_ffn = jnp.concatenate([W1, W2.T], axis=1).astype(compute_dtype)  # (H, 2F)

    vw = max(4 * H, 2 * H + F)
    vecs = jnp.zeros((2, vw), jnp.float32)
    vecs = (vecs.at[0, 0:H].set(bo[0]).at[0, H:2 * H].set(g1[0])
                .at[0, 2 * H:3 * H].set(be1[0]).at[0, 3 * H:4 * H].set(b2[0]))
    vecs = (vecs.at[1, 0:H].set(g2[0]).at[1, H:2 * H].set(be2[0])
                .at[1, 2 * H:2 * H + F].set(b1[0]))
    return (w_heads, w_ffn, vecs)


@jax.jit
def encoder_block(x, packed):
    """x: (B, S, H) float32. packed: output of pack_params()."""
    w_heads, w_ffn, vecs = packed
    B, S, H = x.shape
    F = w_ffn.shape[1] // 2
    Hin = w_heads.shape[1]
    hd = w_heads.shape[2]

    x2 = x.reshape(B * S, H)
    ones = jnp.ones((B * S, 1), x2.dtype)
    zpad = jnp.zeros((B * S, Hin - H - 1), x2.dtype)
    x_aug = jnp.concatenate([x2, ones, zpad], axis=1)            # (B*S, Hin), built host-side

    kernel = functools.partial(
        encoder_block_kernel,
        num_heads=NUM_HEADS, hidden=H, ffn_hidden=F, compute_dtype=w_heads.dtype)

    out2 = pl.pallas_call(
        kernel,
        out_shape=jax.ShapeDtypeStruct((B * S, H), jnp.float32),
        grid=(B,),
        in_specs=[
            pl.BlockSpec((S, Hin), lambda b: (b, 0)),                  # per-batch activation rows
            pl.BlockSpec(w_heads.shape, lambda b: (0, 0, 0)),          # resident head-weight slab
            pl.BlockSpec(w_ffn.shape, lambda b: (0, 0)),               # resident FFN slab
            pl.BlockSpec(vecs.shape, lambda b: (0, 0)),                # resident vector slab
        ],
        out_specs=pl.BlockSpec((S, H), lambda b: (b, 0)),
        compiler_params=pltpu.CompilerParams(
            dimension_semantics=("parallel",),      # v7x: one batch element per TensorCore
            vmem_limit_bytes=32 * 1024 * 1024,
        ),
    )(x_aug, w_heads, w_ffn, vecs)
    return out2.reshape(B, S, H)


def init_params(key, H, F):
    """Deterministic parameter init. Shapes mirror the PyTorch module (W as (in, out))."""
    ks = jax.random.split(key, 8)
    s = 0.1
    Wq = jax.random.normal(ks[0], (H, H), jnp.float32) * s
    Wk = jax.random.normal(ks[1], (H, H), jnp.float32) * s
    Wv = jax.random.normal(ks[2], (H, H), jnp.float32) * s
    Wo = jax.random.normal(ks[3], (H, H), jnp.float32) * s
    bq = jax.random.normal(ks[4], (1, H), jnp.float32) * s
    bk = jax.random.normal(ks[5], (1, H), jnp.float32) * s
    bv = jax.random.normal(ks[6], (1, H), jnp.float32) * s
    bo = jnp.zeros((1, H), jnp.float32)
    g1 = jnp.ones((1, H), jnp.float32)
    be1 = jnp.zeros((1, H), jnp.float32)
    W1 = jax.random.normal(ks[7], (H, F), jnp.float32) * s
    b1 = jnp.zeros((1, F), jnp.float32)
    W2 = jax.random.normal(jax.random.fold_in(key, 99), (F, H), jnp.float32) * s
    b2 = jnp.zeros((1, H), jnp.float32)
    g2 = jnp.ones((1, H), jnp.float32)
    be2 = jnp.zeros((1, H), jnp.float32)
    return [Wq, bq, Wk, bk, Wv, bv, Wo, bo, g1, be1, W1, b1, W2, b2, g2, be2]


def reference_encoder_block(x, params, cast_ops=False):
    """Pure-JAX reference mirroring the PyTorch forward (dropout = identity).

    cast_ops=True rounds matmul operands (and the QKV biases, which the kernel stores in
    its bf16 weight slab) to bf16 with f32 accumulation, matching the kernel's bf16 path.
    """
    (Wq, bq, Wk, bk, Wv, bv, Wo, bo, g1, be1, W1, b1, W2, b2, g2, be2) = params
    B, S, H = x.shape
    hd = H // NUM_HEADS

    def c(a):
        return a.astype(jnp.bfloat16) if cast_ops else a

    def cb(b):  # QKV biases ride in the bf16 weight slab inside the kernel
        return b.astype(jnp.bfloat16).astype(jnp.float32) if cast_ops else b

    def proj(z, W, b):
        return jnp.einsum('bsi,io->bso', c(z), c(W),
                          preferred_element_type=jnp.float32) + cb(b)

    q = proj(x, Wq, bq).reshape(B, S, NUM_HEADS, hd).transpose(0, 2, 1, 3)
    k = proj(x, Wk, bk).reshape(B, S, NUM_HEADS, hd).transpose(0, 2, 1, 3)
    v = proj(x, Wv, bv).reshape(B, S, NUM_HEADS, hd).transpose(0, 2, 1, 3)
    s = jnp.einsum('bhqd,bhkd->bhqk', c(q), c(k),
                   preferred_element_type=jnp.float32) / math.sqrt(hd)
    p = jax.nn.softmax(s, axis=-1)
    o = jnp.einsum('bhqk,bhkd->bhqd', c(p), c(v),
                   preferred_element_type=jnp.float32)
    o = o.transpose(0, 2, 1, 3).reshape(B, S, H)
    o = jnp.einsum('bsi,io->bso', c(o), c(Wo),
                   preferred_element_type=jnp.float32) + bo

    def ln(z, g, b):
        mu = z.mean(-1, keepdims=True)
        var = ((z - mu) ** 2).mean(-1, keepdims=True)
        return (z - mu) / jnp.sqrt(var + LN_EPS) * g + b

    y = ln(o + x, g1, be1)
    hid = jnp.maximum(jnp.einsum('bsi,io->bso', c(y), c(W1),
                                 preferred_element_type=jnp.float32) + b1, 0.0)
    f = jnp.einsum('bsf,fo->bso', c(hid), c(W2),
                   preferred_element_type=jnp.float32) + b2
    return ln(f + y, g2, be2)


if __name__ == "__main__":
    B, S, H, F = 2, 8, 32, 64   # batch, seq, num_hiddens, ffn_num_hiddens
    key = jax.random.PRNGKey(0)
    kx, kp = jax.random.split(key)
    x = jax.random.normal(kx, (B, S, H), jnp.float32)
    params = init_params(kp, H, F)
    ref_f32 = reference_encoder_block(x, params, cast_ops=False)

    # 1) Pure-f32 packing: verifies the packing / head-fold / block structure exactly.
    out_f32 = jax.block_until_ready(encoder_block(x, pack_params(params, jnp.float32)))
    assert out_f32.shape == (B, S, H)
    err_f32 = float(jnp.max(jnp.abs(out_f32 - ref_f32)))
    assert err_f32 < 1e-4, f"f32-path mismatch vs f32 reference: {err_f32:e}"

    # 2) Default bf16-MXU packing: tight vs a bf16-operand-matched reference, loose vs f32.
    out_bf16 = jax.block_until_ready(encoder_block(x, pack_params(params)))
    ref_match = reference_encoder_block(x, params, cast_ops=True)
    err_match = float(jnp.max(jnp.abs(out_bf16 - ref_match)))
    err_vs_f32 = float(jnp.max(jnp.abs(out_bf16 - ref_f32)))
    assert err_match < 5e-3, f"bf16-path mismatch vs matched reference: {err_match:e}"
    assert err_vs_f32 < 6e-2, f"bf16-path drift vs f32 reference: {err_vs_f32:e}"

    print("KERNEL_OK")
</pallas_src>

<mosaic_0001>
module attributes {stable_mosaic.version = 11 : i64} {
  func.func @encoder_block_kernel(%arg0: i32, %arg1: memref<8x40xf32, #tpu.memory_space<vmem>>, %arg2: memref<16x40x8xf32, #tpu.memory_space<vmem>>, %arg3: memref<32x128xf32, #tpu.memory_space<vmem>>, %arg4: memref<2x128xf32, #tpu.memory_space<vmem>>, %arg5: memref<8x32xf32, #tpu.memory_space<vmem>>) attributes {dimension_semantics = [#tpu.dimension_semantics<parallel>], iteration_bounds = array<i64: 2>, scalar_prefetch = 0 : i64, scratch_operands = 0 : i64, tpu.core_type = #tpu.core_type<tc>, window_params = [{transform_indices = @transform_0, window_bounds = array<i64: 8, 40>}, {pipeline_mode = #tpu.pipeline_mode<synchronous>, transform_indices = @transform_1, window_bounds = array<i64: 16, 40, 8>}, {pipeline_mode = #tpu.pipeline_mode<synchronous>, transform_indices = @transform_2, window_bounds = array<i64: 32, 128>}, {pipeline_mode = #tpu.pipeline_mode<synchronous>, transform_indices = @transform_3, window_bounds = array<i64: 2, 128>}, {transform_indices = @transform_4, window_bounds = array<i64: 8, 32>}]} {
    %c0 = arith.constant 0 : index
    %c0_0 = arith.constant 0 : index
    %0 = vector.load %arg1[%c0, %c0_0] : memref<8x40xf32, #tpu.memory_space<vmem>>, vector<8x40xf32>
    %1 = vector.extract_strided_slice %0 {offsets = [0, 0], sizes = [8, 32], strides = [1, 1]} : vector<8x40xf32> to vector<8x32xf32>
    %c0_1 = arith.constant 0 : index
    %c0_2 = arith.constant 0 : index
    %c0_3 = arith.constant 0 : index
    %2 = vector.load %arg2[%c0_1, %c0_2, %c0_3] : memref<16x40x8xf32, #tpu.memory_space<vmem>>, vector<16x40x8xf32>
    %3 = vector.shape_cast %0 : vector<8x40xf32> to vector<1x8x40xf32>
    %4 = vector.shape_cast %3 : vector<1x8x40xf32> to vector<1x8x40xf32>
    %5 = vector.broadcast %4 : vector<1x8x40xf32> to vector<12x8x40xf32>
    %6 = vector.extract_strided_slice %2 {offsets = [0, 0, 0], sizes = [12, 40, 8], strides = [1, 1, 1]} : vector<16x40x8xf32> to vector<12x40x8xf32>
    "tpu.trace_start"() <{level = 10 : i32, message = "hri,hio->hro"}> : () -> ()
    %cst = arith.constant dense<0.000000e+00> : vector<12x8x8xf32>
    %7 = tpu.matmul %5, %6, %cst {dimension_numbers = #tpu.dot_dimension_numbers<[2], [1], [1], [2], [0, 0, 0, 1, 1, 2], [0], [0]>} : vector<12x8x40xf32>, vector<12x40x8xf32>, vector<12x8x8xf32> -> vector<12x8x8xf32>
    "tpu.trace_stop"() : () -> ()
    %8 = vector.extract_strided_slice %7 {offsets = [0, 0, 0], sizes = [4, 8, 8], strides = [1, 1, 1]} : vector<12x8x8xf32> to vector<4x8x8xf32>
    %9 = vector.extract_strided_slice %7 {offsets = [4, 0, 0], sizes = [4, 8, 8], strides = [1, 1, 1]} : vector<12x8x8xf32> to vector<4x8x8xf32>
    %10 = vector.extract_strided_slice %7 {offsets = [8, 0, 0], sizes = [4, 8, 8], strides = [1, 1, 1]} : vector<12x8x8xf32> to vector<4x8x8xf32>
    "tpu.trace_start"() <{level = 10 : i32, message = "hqd,hkd->hqk"}> : () -> ()
    %cst_4 = arith.constant dense<0.000000e+00> : vector<4x8x8xf32>
    %11 = tpu.matmul %8, %9, %cst_4 {dimension_numbers = #tpu.dot_dimension_numbers<[2], [2], [1], [1], [0, 0, 0, 1, 1, 1], [0], [0]>} : vector<4x8x8xf32>, vector<4x8x8xf32>, vector<4x8x8xf32> -> vector<4x8x8xf32>
    "tpu.trace_stop"() : () -> ()
    %cst_5 = arith.constant 0.353553385 : f32
    %12 = vector.broadcast %cst_5 : f32 to vector<4x8x8xf32>
    %13 = arith.mulf %11, %12 : vector<4x8x8xf32>
    %cst_6 = arith.constant dense<0xFF800000> : vector<4x8xf32>
    %14 = vector.multi_reduction <maximumf>, %13, %cst_6 [2] : vector<4x8x8xf32> to vector<4x8xf32>
    %15 = vector.shape_cast %14 : vector<4x8xf32> to vector<4x8x1xf32>
    %16 = vector.broadcast %15 : vector<4x8x1xf32> to vector<4x8x8xf32>
    %17 = arith.subf %13, %16 : vector<4x8x8xf32>
    %18 = math.exp %17 : vector<4x8x8xf32>
    %cst_7 = arith.constant dense<0.000000e+00> : vector<4x8xf32>
    %19 = vector.multi_reduction <add>, %18, %cst_7 [2] : vector<4x8x8xf32> to vector<4x8xf32>
    %20 = vector.shape_cast %19 : vector<4x8xf32> to vector<4x8x1xf32>
    %21 = tpu.reciprocal %20 {approx = true} : vector<4x8x1xf32> -> vector<4x8x1xf32>
    %22 = arith.mulf %20, %21 : vector<4x8x1xf32>
    %cst_8 = arith.constant 2.000000e+00 : f32
    %23 = vector.broadcast %cst_8 : f32 to vector<4x8x1xf32>
    %24 = arith.subf %23, %22 : vector<4x8x1xf32>
    %25 = arith.mulf %21, %24 : vector<4x8x1xf32>
    %26 = vector.broadcast %25 : vector<4x8x1xf32> to vector<4x8x8xf32>
    %27 = arith.mulf %18, %26 : vector<4x8x8xf32>
    "tpu.trace_start"() <{level = 10 : i32, message = "hqk,hkd->hqd"}> : () -> ()
    %cst_9 = arith.constant dense<0.000000e+00> : vector<4x8x8xf32>
    %28 = tpu.matmul %27, %10, %cst_9 {dimension_numbers = #tpu.dot_dimension_numbers<[2], [1], [1], [2], [0, 0, 0, 1, 1, 2], [0], [0]>} : vector<4x8x8xf32>, vector<4x8x8xf32>, vector<4x8x8xf32> -> vector<4x8x8xf32>
    "tpu.trace_stop"() : () -> ()
    %29 = vector.extract_strided_slice %2 {offsets = [12, 0, 0], sizes = [4, 32, 8], strides = [1, 1, 1]} : vector<16x40x8xf32> to vector<4x32x8xf32>
    "tpu.trace_start"() <{level = 10 : i32, message = "hrd,hod->hro"}> : () -> ()
    %cst_10 = arith.constant dense<0.000000e+00> : vector<4x8x32xf32>
    %30 = tpu.matmul %28, %29, %cst_10 {dimension_numbers = #tpu.dot_dimension_numbers<[2], [2], [1], [1], [0, 0, 0, 1, 1, 1], [0], [0]>} : vector<4x8x8xf32>, vector<4x32x8xf32>, vector<4x8x32xf32> -> vector<4x8x32xf32>
    "tpu.trace_stop"() : () -> ()
    %31 = vector.extract_strided_slice %30 {offsets = [0, 0, 0], sizes = [1, 8, 32], strides = [1, 1, 1]} : vector<4x8x32xf32> to vector<1x8x32xf32>
    %32 = vector.shape_cast %31 : vector<1x8x32xf32> to vector<8x32xf32>
    %33 = vector.extract_strided_slice %30 {offsets = [1, 0, 0], sizes = [1, 8, 32], strides = [1, 1, 1]} : vector<4x8x32xf32> to vector<1x8x32xf32>
    %34 = vector.shape_cast %33 : vector<1x8x32xf32> to vector<8x32xf32>
    %35 = arith.addf %32, %34 : vector<8x32xf32>
    %36 = vector.extract_strided_slice %30 {offsets = [2, 0, 0], sizes = [1, 8, 32], strides = [1, 1, 1]} : vector<4x8x32xf32> to vector<1x8x32xf32>
    %37 = vector.shape_cast %36 : vector<1x8x32xf32> to vector<8x32xf32>
    %38 = arith.addf %35, %37 : vector<8x32xf32>
    %39 = vector.extract_strided_slice %30 {offsets = [3, 0, 0], sizes = [1, 8, 32], strides = [1, 1, 1]} : vector<4x8x32xf32> to vector<1x8x32xf32>
    %40 = vector.shape_cast %39 : vector<1x8x32xf32> to vector<8x32xf32>
    %41 = arith.addf %38, %40 : vector<8x32xf32>
    %c0_11 = arith.constant 0 : index
    %c0_12 = arith.constant 0 : index
    %42 = vector.load %arg4[%c0_11, %c0_12] : memref<2x128xf32, #tpu.memory_space<vmem>>, vector<1x32xf32>
    %c0_13 = arith.constant 0 : index
    %c32 = arith.constant 32 : index
    %43 = vector.load %arg4[%c0_13, %c32] : memref<2x128xf32, #tpu.memory_space<vmem>>, vector<1x32xf32>
    %c0_14 = arith.constant 0 : index
    %c64 = arith.constant 64 : index
    %44 = vector.load %arg4[%c0_14, %c64] : memref<2x128xf32, #tpu.memory_space<vmem>>, vector<1x32xf32>
    %c0_15 = arith.constant 0 : index
    %c96 = arith.constant 96 : index
    %45 = vector.load %arg4[%c0_15, %c96] : memref<2x128xf32, #tpu.memory_space<vmem>>, vector<1x32xf32>
    %c1 = arith.constant 1 : index
    %c0_16 = arith.constant 0 : index
    %46 = vector.load %arg4[%c1, %c0_16] : memref<2x128xf32, #tpu.memory_space<vmem>>, vector<1x32xf32>
    %c1_17 = arith.constant 1 : index
    %c32_18 = arith.constant 32 : index
    %47 = vector.load %arg4[%c1_17, %c32_18] : memref<2x128xf32, #tpu.memory_space<vmem>>, vector<1x32xf32>
    %c1_19 = arith.constant 1 : index
    %c64_20 = arith.constant 64 : index
    %48 = vector.load %arg4[%c1_19, %c64_20] : memref<2x128xf32, #tpu.memory_space<vmem>>, vector<1x64xf32>
    %49 = vector.broadcast %42 : vector<1x32xf32> to vector<8x32xf32>
    %50 = arith.addf %41, %49 : vector<8x32xf32>
    %51 = arith.addf %50, %1 : vector<8x32xf32>
    %cst_21 = arith.constant dense<0.000000e+00> : vector<8xf32>
    %52 = vector.multi_reduction <add>, %51, %cst_21 [1] : vector<8x32xf32> to vector<8xf32>
    %53 = vector.shape_cast %52 : vector<8xf32> to vector<8x1xf32>
    %cst_22 = arith.constant 3.200000e+01 : f32
    %54 = vector.broadcast %cst_22 : f32 to vector<8x1xf32>
    %55 = arith.divf %53, %54 : vector<8x1xf32>
    %56 = arith.mulf %51, %51 : vector<8x32xf32>
    %cst_23 = arith.constant dense<0.000000e+00> : vector<8xf32>
    %57 = vector.multi_reduction <add>, %56, %cst_23 [1] : vector<8x32xf32> to vector<8xf32>
    %58 = vector.shape_cast %57 : vector<8xf32> to vector<8x1xf32>
    %cst_24 = arith.constant 3.200000e+01 : f32
    %59 = vector.broadcast %cst_24 : f32 to vector<8x1xf32>
    %60 = arith.divf %58, %59 : vector<8x1xf32>
    %61 = arith.mulf %55, %55 : vector<8x1xf32>
    %62 = arith.subf %60, %61 : vector<8x1xf32>
    %63 = vector.broadcast %55 : vector<8x1xf32> to vector<8x32xf32>
    %64 = arith.subf %51, %63 : vector<8x32xf32>
    %cst_25 = arith.constant 9.99999974E-6 : f32
    %65 = vector.broadcast %cst_25 : f32 to vector<8x1xf32>
    %66 = arith.addf %62, %65 : vector<8x1xf32>
    %67 = math.rsqrt %66 : vector<8x1xf32>
    %68 = vector.broadcast %67 : vector<8x1xf32> to vector<8x32xf32>
    %69 = arith.mulf %64, %68 : vector<8x32xf32>
    %70 = vector.broadcast %43 : vector<1x32xf32> to vector<8x32xf32>
    %71 = arith.mulf %69, %70 : vector<8x32xf32>
    %72 = vector.broadcast %44 : vector<1x32xf32> to vector<8x32xf32>
    %73 = arith.addf %71, %72 : vector<8x32xf32>
    %c0_26 = arith.constant 0 : index
    %c0_27 = arith.constant 0 : index
    %74 = vector.load %arg3[%c0_26, %c0_27] : memref<32x128xf32, #tpu.memory_space<vmem>>, vector<32x64xf32>
    %c0_28 = arith.constant 0 : index
    %c64_29 = arith.constant 64 : index
    %75 = vector.load %arg3[%c0_28, %c64_29] : memref<32x128xf32, #tpu.memory_space<vmem>>, vector<32x64xf32>
    "tpu.trace_start"() <{level = 10 : i32, message = "rh,hf->rf"}> : () -> ()
    %cst_30 = arith.constant dense<0.000000e+00> : vector<8x64xf32>
    %76 = tpu.matmul %73, %74, %cst_30 {dimension_numbers = #tpu.dot_dimension_numbers<[1], [0], [0], [1], [0, 0, 1, 1], [], []>} : vector<8x32xf32>, vector<32x64xf32>, vector<8x64xf32> -> vector<8x64xf32>
    "tpu.trace_stop"() : () -> ()
    %77 = vector.broadcast %48 : vector<1x64xf32> to vector<8x64xf32>
    %78 = arith.addf %76, %77 : vector<8x64xf32>
    %cst_31 = arith.constant 0.000000e+00 : f32
    %79 = vector.broadcast %cst_31 : f32 to vector<8x64xf32>
    %80 = arith.maximumf %78, %79 : vector<8x64xf32>
    "tpu.trace_start"() <{level = 10 : i32, message = "rf,of->ro"}> : () -> ()
    %cst_32 = arith.constant dense<0.000000e+00> : vector<8x32xf32>
    %81 = tpu.matmul %80, %75, %cst_32 {dimension_numbers = #tpu.dot_dimension_numbers<[1], [1], [0], [0], [0, 0, 1, 0], [], []>} : vector<8x64xf32>, vector<32x64xf32>, vector<8x32xf32> -> vector<8x32xf32>
    "tpu.trace_stop"() : () -> ()
    %82 = vector.broadcast %45 : vector<1x32xf32> to vector<8x32xf32>
    %83 = arith.addf %81, %82 : vector<8x32xf32>
    %84 = arith.addf %83, %73 : vector<8x32xf32>
    %cst_33 = arith.constant dense<0.000000e+00> : vector<8xf32>
    %85 = vector.multi_reduction <add>, %84, %cst_33 [1] : vector<8x32xf32> to vector<8xf32>
    %86 = vector.shape_cast %85 : vector<8xf32> to vector<8x1xf32>
    %cst_34 = arith.constant 3.200000e+01 : f32
    %87 = vector.broadcast %cst_34 : f32 to vector<8x1xf32>
    %88 = arith.divf %86, %87 : vector<8x1xf32>
    %89 = arith.mulf %84, %84 : vector<8x32xf32>
    %cst_35 = arith.constant dense<0.000000e+00> : vector<8xf32>
    %90 = vector.multi_reduction <add>, %89, %cst_35 [1] : vector<8x32xf32> to vector<8xf32>
    %91 = vector.shape_cast %90 : vector<8xf32> to vector<8x1xf32>
    %cst_36 = arith.constant 3.200000e+01 : f32
    %92 = vector.broadcast %cst_36 : f32 to vector<8x1xf32>
    %93 = arith.divf %91, %92 : vector<8x1xf32>
    %94 = arith.mulf %88, %88 : vector<8x1xf32>
    %95 = arith.subf %93, %94 : vector<8x1xf32>
    %96 = vector.broadcast %88 : vector<8x1xf32> to vector<8x32xf32>
    %97 = arith.subf %84, %96 : vector<8x32xf32>
    %cst_37 = arith.constant 9.99999974E-6 : f32
    %98 = vector.broadcast %cst_37 : f32 to vector<8x1xf32>
    %99 = arith.addf %95, %98 : vector<8x1xf32>
    %100 = math.rsqrt %99 : vector<8x1xf32>
    %101 = vector.broadcast %100 : vector<8x1xf32> to vector<8x32xf32>
    %102 = arith.mulf %97, %101 : vector<8x32xf32>
    %103 = vector.broadcast %46 : vector<1x32xf32> to vector<8x32xf32>
    %104 = arith.mulf %102, %103 : vector<8x32xf32>
    %105 = vector.broadcast %47 : vector<1x32xf32> to vector<8x32xf32>
    %106 = arith.addf %104, %105 : vector<8x32xf32>
    %c0_38 = arith.constant 0 : index
    %c0_39 = arith.constant 0 : index
    %107 = vector.load %arg5[%c0_38, %c0_39] : memref<8x32xf32, #tpu.memory_space<vmem>>, vector<8x32xf32>
    tpu.vector_store %arg5[%c0_38, %c0_39], %106 {strides = array<i32>} : memref<8x32xf32, #tpu.memory_space<vmem>>, vector<8x32xf32>,
    return
  }
  func.func @transform_0(%arg0: i32) -> (i32, i32) {
    %c0_i32 = arith.constant 0 : i32
    %c0_i32_0 = arith.constant 0 : i32
    return %arg0, %c0_i32 : i32, i32
  }
  func.func @transform_1(%arg0: i32) -> (i32, i32, i32) {
    %c0_i32 = arith.constant 0 : i32
    %c0_i32_0 = arith.constant 0 : i32
    %c0_i32_1 = arith.constant 0 : i32
    %c0_i32_2 = arith.constant 0 : i32
    return %c0_i32, %c0_i32_0, %c0_i32_1 : i32, i32, i32
  }
  func.func @transform_2(%arg0: i32) -> (i32, i32) {
    %c0_i32 = arith.constant 0 : i32
    %c0_i32_0 = arith.constant 0 : i32
    %c0_i32_1 = arith.constant 0 : i32
    return %c0_i32, %c0_i32_0 : i32, i32
  }
  func.func @transform_3(%arg0: i32) -> (i32, i32) {
    %c0_i32 = arith.constant 0 : i32
    %c0_i32_0 = arith.constant 0 : i32
    %c0_i32_1 = arith.constant 0 : i32
    return %c0_i32, %c0_i32_0 : i32, i32
  }
  func.func @transform_4(%arg0: i32) -> (i32, i32) {
    %c0_i32 = arith.constant 0 : i32
    %c0_i32_0 = arith.constant 0 : i32
    return %arg0, %c0_i32 : i32, i32
  }
}

</mosaic_0001>

<bundles_post_ra>
// kernel: encoder_block.1
= control target key start
LH: loop header
LB: loop body
LE: loop exit
PB: predicated region body
PF: predicated region fallthrough
CT: control target
= control target key end

     0   :  { %9 = vsyncpa [#allocation3], 0  ;;  %s3706_s0 = inlined_call_operand.vmem [shape: f32[16,40], index: 0, kind: input, shape index: {}]   ;;  %s3707_s1 = inlined_call_operand.vmem [shape: f32[16,40,8], index: 1, kind: input, shape index: {}]   ;;  %s3708_s2 = inlined_call_operand.vmem [shape: f32[32,128], index: 2, kind: input, shape index: {}]   ;;  %s3709_s3 = inlined_call_operand.vmem [shape: f32[2,128], index: 3, kind: input, shape index: {}]   ;;  %s3710_s4 = inlined_call_operand.hbm [shape: f32[16,32], index: 4, kind: output, shape index: {}]  }
   0x1   :  { %11 = vsyncpa [#allocation3 + $0x1], 0  ;;  %s3157_s15 = smov 0   ;;  %s3159_s16 = smov 0  }
   0x2   :  { %s3161_s17 = smov 0   ;;  %s3163_s18 = smov 0  }
   0x3 LB: > { %s3178_s19 = sadd.s32 4294967295, %s3123_s18   ;;  %s2426_s20 = sadd.s32 4294967294, %s3123_s18   ;;  %s3123_s18 = sphi %s3163_s18, %s3718_s18   ;;  %s3119_s17 = sphi %s3161_s17, %s3717_s17   ;;  %s3115_s16 = sphi %s3159_s16, %s3716_s16   ;;  %s3111_s15 = sphi %s3157_s15, %s3715_s15  }
   0x4   : > { %s3182_s21 = sadd.s32 1, %s3123_s18   ;;  %s113_s22 = sadd.s32 1, %s3119_s17 }
   0x5   : > { %s110_s23 = ssub.s32 %s3123_s18, %s3182_s21  ;;  %p123_p0 = scmp.ne.s32.totalorder %s3119_s17, %s3115_s16 }
   0x6   : > { %p111_p1 = scmp.eq.s32.totalorder %s110_s23, 0  ;;  %p124_p2 = scmp.eq.s32.totalorder %s3178_s19, 1 }
   0x7   : > { %p129_p3 = scmp.ne.s32.totalorder %s3115_s16, %s3111_s15  ;;  %p130_p4 = scmp.eq.s32.totalorder %s2426_s20, 1 }
   0x8   : > { %s3193_s24 = scalar_select %p111_p1, %s3119_s17, %s113_s22  }
   0x9   : > { %p3195_p5 = por %p124_p2, %p123_p0  ;;  %p3199_p6 = por %p130_p4, %p129_p3 }
   0xa   : > { %p2429_p7 = scmp.ge.s32.totalorder %s3123_s18, 1  ;;  %p164_p8 = scmp.lt.s32.totalorder %s3123_s18, 3 }
   0xc   : > { %p165_p9 = pnand %p2429_p7, %p164_p8 }
   0xd   : > { %v194_v0 = vld [vmem:[%s3707_s1] sm:$0xff] (!%p165_p9)  ;;  %v195_v1 = vld [vmem:[%s3707_s1 + $0x8] sm:$0xff] (!%p165_p9)  ;;  %v3125_v3 = vmov (!%p165_p9), 0.0|0.0   ;;  %v200_v5 = vld [vmem:[%s3707_s1 + $0x30] sm:$0xff] (!%p165_p9)  ;;  %p189_p10 = scmp.lt.s32.totalorder (!%p165_p9), %s3178_s19, 1  ;;  %vm3126_vm0 = vmmov (!%p165_p9), 0  }
   0xe   : > { %168 = sbr.rel (%p165_p9) target bundleno = 2028 (0x7ec), region = 36  ;;  %v199_v2 = vld [vmem:[%s3707_s1 + $0x28] sm:$0xff] (!%p165_p9)  ;;  %2868 = vmatprep.subr.bf16.mxu0 (!%p165_p9), %v3125_v3  ;;  %2874 = vmatprep.subr.bf16.mxu1 (!%p165_p9), %v3125_v3  ;;  %v2869_v4 = vpack.c.bf16 (!%p165_p9), %v195_v1, %v194_v0  ;;  %v196_v6 = vld [vmem:[%s3707_s1 + $0x10] sm:$0xff] (!%p165_p9)  ;;  %v197_v7 = vld [vmem:[%s3707_s1 + $0x18] sm:$0xff] (!%p165_p9)  ;;  %v3127_v11 = vmov (!%p165_p9), 0.0   ;;  %vm270_vm1 = vcmask (!%p165_p9), 326656  }
   0xf   : > { %v2875_v8 = vpack.c.bf16 (!%p165_p9), %v200_v5, %v199_v2  ;;  %v201_v9 = vld [vmem:[%s3707_s1 + $0x38] sm:$0xff] (!%p165_p9)  ;;  %v202_v10 = vld [vmem:[%s3707_s1 + $0x40] sm:$0xff] (!%p165_p9)  ;;  %2616 = vmatprep.mubr.msk.f32.mxu0 (!%p165_p9), %vm3126_vm0, %v3127_v11  ;;  %2629 = vmatprep.mubr.msk.f32.mxu1 (!%p165_p9), %vm3126_vm0, %v3127_v11  ;;  %v2872_v12 = vpack.c.bf16 (!%p165_p9), %v197_v7, %v196_v6  ;;  %v204_v14 = vld [vmem:[%s3707_s1 + $0x50] sm:$0xff] (!%p165_p9)  ;;  %vm1114_vm2 = vcmask (!%p165_p9), 64512   ;;  %vm2122_vm4 = vcmask (!%p165_p9), 261120   ;;  %s3128_s7 = smov (!%p165_p9), 64  }
  0x10   : > { %2870 = vmatpush3.bf16.msra.mxu0 (!%p165_p9), %v2869_v4  ;;  %v2878_v13 = vpack.c.bf16 (!%p165_p9), %v202_v10, %v201_v9  ;;  %v205_v15 = vld [vmem:[%s3707_s1 + $0x58] sm:$0xff] (!%p165_p9)  ;;  %v198_v16 = vld [vmem:[%s3707_s1 + $0x20] sm:$0xff] (!%p165_p9)  ;;  %v203_v19 = vld [vmem:[%s3707_s1 + $0x48] sm:$0xff] (!%p165_p9)  ;;  %s3129_s8 = smov (!%p165_p9), 96   ;;  %vm2249_vm5 = vcmask (!%p165_p9), 523264   ;;  %s3130_s28 = smov (!%p165_p9), 32  }
  0x11   : > { %2876 = vmatpush3.bf16.msra.mxu1 (!%p165_p9), %v2875_v8  ;;  %2871 = vmatprep.subr.bf16.mxu0 (!%p165_p9), %v3125_v3  ;;  %v209_v17 = vld [vmem:[%s3707_s1 + $0x78] sm:$0xff] (!%p165_p9)  ;;  %v210_v18 = vld [vmem:[%s3707_s1 + $0x80] sm:$0xff] (!%p165_p9)  ;;  %v2881_v21 = vpack.c.bf16 (!%p165_p9), %v205_v15, %v204_v14  ;;  %v207_v24 = vld [vmem:[%s3707_s1 + $0x68] sm:$0xff] (!%p165_p9)  ;;  %s186_s29 = sand.u32 (!%p165_p9), 1, %s3115_s16   ;;  %s2485_s6 = sshll.u32 (!%p165_p9), %s3178_s19, 7 }
  0x12   : > { %2877 = vmatprep.subr.bf16.mxu1 (!%p165_p9), %v3125_v3  ;;  %v2887_v22 = vpack.c.bf16 (!%p165_p9), %v210_v18, %v209_v17  ;;  %v206_v23 = vld [vmem:[%s3707_s1 + $0x60] sm:$0xff] (!%p165_p9)  ;;  %v211_v25 = vld [vmem:[%s3707_s1 + $0x88] sm:$0xff] (!%p165_p9)  ;;  %v212_v26 = vld [vmem:[%s3707_s1 + $0x90] sm:$0xff] (!%p165_p9)  ;;  %s2430_s5 = sshll.u32 (!%p165_p9), %s186_s29, 3  ;;  %s3663_s10 = scalar_lea.hbm (!%p165_p9), %s3710_s4, %s2485_s6 }
  0x13   : > { %v2884_v27 = vpack.c.bf16 (!%p165_p9), %v207_v24, %v206_v23  ;;  %v2890_v28 = vpack.c.bf16 (!%p165_p9), %v212_v26, %v211_v25  ;;  %v214_v29 = vld [vmem:[%s3707_s1 + $0xa0] sm:$0xff] (!%p165_p9)  ;;  %v215_v30 = vld [vmem:[%s3707_s1 + $0xa8] sm:$0xff] (!%p165_p9)  ;;  %v208_v31 = vld [vmem:[%s3707_s1 + $0x70] sm:$0xff] (!%p165_p9)  ;;  %s2354_s11 = scalar_lea.sflag (!%p165_p9), [#allocation3], %s186_s29 }
  0x14   : > { %2873 = vmatpush3.bf16.msra.mxu0 (!%p165_p9), %v2872_v12  ;;  %v219_v32 = vld [vmem:[%s3707_s1 + $0xc8] sm:$0xff] (!%p165_p9)  ;;  %v220_v33 = vld [vmem:[%s3707_s1 + $0xd0] sm:$0xff] (!%p165_p9)  ;;  %v213_v34 = vld [vmem:[%s3707_s1 + $0x98] sm:$0xff] (!%p165_p9)  ;;  %v2893_v35 = vpack.c.bf16 (!%p165_p9), %v215_v30, %v214_v29 }
  0x15   : > { %s190_s23 = scalar_select %p189_p10, %s3178_s19, 1  ;;  %2879 = vmatpush3.bf16.msra.mxu1 %v2878_v13  ;;  %2614 = vmatprep.subr.mxu0 %v3127_v11  ;;  %v2899_v36 = vpack.c.bf16 %v220_v33, %v219_v32  ;;  %v216_v37 = vld [vmem:[%s3707_s1 + $0xb0] sm:$0xff]  ;;  %v217_v38 = vld [vmem:[%s3707_s1 + $0xb8] sm:$0xff]  ;;  %v222_v40 = vld [vmem:[%s3707_s1 + $0xe0] sm:$0xff] }
  0x16   : > { %2627 = vmatprep.subr.mxu1 %v3127_v11  ;;  %v221_v39 = vld [vmem:[%s3707_s1 + $0xd8] sm:$0xff]  ;;  %v2896_v41 = vpack.c.bf16 %v217_v38, %v216_v37  ;;  %v224_v43 = vld [vmem:[%s3707_s1 + $0xf0] sm:$0xff]  ;;  %v218_v45 = vld [vmem:[%s3707_s1 + $0xc0] sm:$0xff]  ;;  %s3131_s19 = smov [#allocation2]  }
  0x17   : > { %s2431_s27 = sshll.u32 %s190_s23, 3  ;;  %v2902_v42 = vpack.c.bf16 %v222_v40, %v221_v39  ;;  %v225_v44 = vld [vmem:[%s3707_s1 + $0xf8] sm:$0xff]  ;;  %v230_v47 = vld [vmem:[%s3707_s1 + $0x120] sm:$0xff]  ;;  %v223_v48 = vld [vmem:[%s3707_s1 + $0xe8] sm:$0xff]  ;;  %s3065_s13 = sshll.u32 %s3131_s19, 4  ;;  %s3066_s13 = int_to_ptr.vmem [resolvable:$false] %s3065_s13 }
  0x18   : > { %s192_s30 = scalar_lea.vmem %s3706_s0, %s2431_s27  ;;  %2615 = vmatpush3.msra.mxu0 %v198_v16  ;;  %v229_v46 = vld [vmem:[%s3707_s1 + $0x118] sm:$0xff]  ;;  %v2905_v49 = vpack.c.bf16 %v225_v44, %v224_v43  ;;  %v226_v51 = vld [vmem:[%s3707_s1 + $0x100] sm:$0xff]  ;;  %v227_v52 = vld [vmem:[%s3707_s1 + $0x108] sm:$0xff]  ;;  %s3067_s14 = scalar_lea.vmem %s3066_s13, 256 }
  0x19   : > { %v3262_v20 = vld [vmem:[%s192_s30] sm:$0xff]  ;;  %2628 = vmatpush3.msra.mxu1 %v203_v19  ;;  %2880 = vmatprep.subr.bf16.mxu0 %v3125_v3  ;;  %v2911_v50 = vpack.c.bf16 %v230_v47, %v229_v46  ;;  %v231_v53 = vld [vmem:[%s3707_s1 + $0x128] sm:$0xff]  ;;  %v232_v54 = vld [vmem:[%s3707_s1 + $0x130] sm:$0xff]  ;;  %v2908_v55 = vpack.c.bf16 %v227_v52, %v226_v51  ;;  %s188_s30 = scalar_lea.vmem [#allocation2], %s2430_s5 }
  0x1a   : > { %2617 = vmatmul.mubr.msk.f32.vlgmr.msra.gmra.mrb[0].mxu0 %vm270_vm1, %v3262_v20  ;;  %2886 = vmatprep.subr.bf16.mxu1 %v3125_v3  ;;  %v2914_v56 = vpack.c.bf16 %v232_v54, %v231_v53  ;;  %v234_v57 = vld [vmem:[%s3707_s1 + $0x140] sm:$0xff]  ;;  %v235_v58 = vld [vmem:[%s3707_s1 + $0x148] sm:$0xff]  ;;  %v228_v59 = vld [vmem:[%s3707_s1 + $0x110] sm:$0xff] }
  0x1b   : > { %2630 = vmatmul.mubr.msk.f32.vlgmr.msra.gmra.mrb[0].mxu1 %vm270_vm1, %v3262_v20  ;;  %2882 = vmatpush3.bf16.msra.mxu0 %v2881_v21  ;;  %v233_v60 = vld [vmem:[%s3707_s1 + $0x138] sm:$0xff]  ;;  %v2917_v61 = vpack.c.bf16 %v235_v58, %v234_v57  ;;  %v236_v62 = vld [vmem:[%s3707_s1 + $0x150] sm:$0xff]  ;;  %v239_v1 = vld [vmem:[%s3707_s1 + $0x168] sm:$0xff] }
  0x1c   : > { %2888 = vmatpush3.bf16.msra.mxu1 %v2887_v22  ;;  %2883 = vmatprep.subr.bf16.mxu0 %v3125_v3  ;;  %v237_v63 = vld [vmem:[%s3707_s1 + $0x158] sm:$0xff]  ;;  %v240_v2 = vld [vmem:[%s3707_s1 + $0x170] sm:$0xff]  ;;  %v238_v5 = vld [vmem:[%s3707_s1 + $0x160] sm:$0xff] }
  0x1d   : > { %2889 = vmatprep.subr.bf16.mxu1 %v3125_v3  ;;  %2642 = vmatprep.mubr.msk.f32.mxu0 %vm3126_vm0, %v3127_v11  ;;  %v2920_v0 = vpack.c.bf16 %v237_v63, %v236_v62  ;;  %v244_v4 = vld [vmem:[%s3707_s1 + $0x190] sm:$0xff]  ;;  %v2923_v6 = vpack.c.bf16 %v240_v2, %v239_v1  ;;  %v245_v7 = vld [vmem:[%s3707_s1 + $0x198] sm:$0xff]  ;;  %v242_v10 = vld [vmem:[%s3707_s1 + $0x180] sm:$0xff] }
  0x1e   : > { %2655 = vmatprep.mubr.msk.f32.mxu1 %vm3126_vm0, %v3127_v11  ;;  %v2929_v8 = vpack.c.bf16 %v245_v7, %v244_v4  ;;  %v241_v9 = vld [vmem:[%s3707_s1 + $0x178] sm:$0xff]  ;;  %v246_v12 = vld [vmem:[%s3707_s1 + $0x1a0] sm:$0xff]  ;;  %v247_v14 = vld [vmem:[%s3707_s1 + $0x1a8] sm:$0xff] }
  0x1f   : > { %2885 = vmatpush3.bf16.msra.mxu0 %v2884_v27  ;;  %v2926_v13 = vpack.c.bf16 %v242_v10, %v241_v9  ;;  %v2932_v15 = vpack.c.bf16 %v247_v14, %v246_v12  ;;  %v249_v16 = vld [vmem:[%s3707_s1 + $0x1b8] sm:$0xff]  ;;  %v250_v17 = vld [vmem:[%s3707_s1 + $0x1c0] sm:$0xff]  ;;  %v243_v18 = vld [vmem:[%s3707_s1 + $0x188] sm:$0xff] }
  0x20   : > { %2891 = vmatpush3.bf16.msra.mxu1 %v2890_v28  ;;  %2640 = vmatprep.subr.mxu0 %v3127_v11  ;;  %v248_v19 = vld [vmem:[%s3707_s1 + $0x1b0] sm:$0xff]  ;;  %v2935_v21 = vpack.c.bf16 %v250_v17, %v249_v16  ;;  %v251_v22 = vld [vmem:[%s3707_s1 + $0x1c8] sm:$0xff]  ;;  %v253_v25 = vld [vmem:[%s3707_s1 + $0x1d8] sm:$0xff] }
  0x21   : > { %2653 = vmatprep.subr.mxu1 %v3127_v11  ;;  %v252_v23 = vld [vmem:[%s3707_s1 + $0x1d0] sm:$0xff]  ;;  %vm3534_vm3 = vmpackc.low %vm1114_vm2, %vm1114_vm2 }
  0x22   : > { %v2938_v24 = vpack.c.bf16 %v252_v23, %v251_v22  ;;  %vm2980_vm6 = vmpackc.low %vm2249_vm5, %vm2249_vm5 }
  0x23   : > { %2641 = vmatpush3.msra.mxu0 %v208_v31 }
  0x24   : > { %2654 = vmatpush3.msra.mxu1 %v213_v34  ;;  %2643 = vmatmul.mubr.msk.f32.vlgmr.msra.gmra.mrb[2].mxu0 %vm270_vm1, %v3262_v20 }
  0x25   : > { %2892 = vmatprep.subr.bf16.mxu0 %v3125_v3  ;;  %2898 = vmatprep.subr.bf16.mxu1 %v3125_v3 }
  0x26   : > { %2656 = vmatmul.mubr.msk.f32.vlgmr.msra.gmra.mrb[2].mxu1 %vm270_vm1, %v3262_v20  ;;  %2894 = vmatpush3.bf16.msra.mxu0 %v2893_v35 }
  0x27   : > { %2900 = vmatpush3.bf16.msra.mxu1 %v2899_v36  ;;  %2895 = vmatprep.subr.bf16.mxu0 %v3125_v3 }
  0x28   : > { %2901 = vmatprep.subr.bf16.mxu1 %v3125_v3  ;;  %2668 = vmatprep.mubr.msk.f32.mxu0 %vm3126_vm0, %v3127_v11 }
  0x29   : > { %2681 = vmatprep.mubr.msk.f32.mxu1 %vm3126_vm0, %v3127_v11 }
  0x2a   : > { %2897 = vmatpush3.bf16.msra.mxu0 %v2896_v41 }
  0x2b   : > { %2903 = vmatpush3.bf16.msra.mxu1 %v2902_v42  ;;  %2666 = vmatprep.subr.mxu0 %v3127_v11 }
  0x2c   : > { %2679 = vmatprep.subr.mxu1 %v3127_v11 }
  0x2e   : > { %2667 = vmatpush3.msra.mxu0 %v218_v45 }
  0x2f   : > { %2680 = vmatpush3.msra.mxu1 %v223_v48  ;;  %2669 = vmatmul.mubr.msk.f32.vlgmr.msra.gmra.mrb[4].mxu0 %vm270_vm1, %v3262_v20 }
  0x30   : > { %2904 = vmatprep.subr.bf16.mxu0 %v3125_v3  ;;  %2910 = vmatprep.subr.bf16.mxu1 %v3125_v3 }
  0x31   : > { %2682 = vmatmul.mubr.msk.f32.vlgmr.msra.gmra.mrb[4].mxu1 %vm270_vm1, %v3262_v20  ;;  %2906 = vmatpush3.bf16.msra.mxu0 %v2905_v49 }
  0x32   : > { %2912 = vmatpush3.bf16.msra.mxu1 %v2911_v50  ;;  %2907 = vmatprep.subr.bf16.mxu0 %v3125_v3 }
  0x33   : > { %2913 = vmatprep.subr.bf16.mxu1 %v3125_v3  ;;  %2694 = vmatprep.mubr.msk.f32.mxu0 %vm3126_vm0, %v3127_v11 }
  0x34   : > { %2707 = vmatprep.mubr.msk.f32.mxu1 %vm3126_vm0, %v3127_v11 }
  0x35   : > { %2909 = vmatpush3.bf16.msra.mxu0 %v2908_v55 }
  0x36   : > { %2915 = vmatpush3.bf16.msra.mxu1 %v2914_v56  ;;  %2692 = vmatprep.subr.mxu0 %v3127_v11 }
  0x37   : > { %2705 = vmatprep.subr.mxu1 %v3127_v11 }
  0x39   : > { %2693 = vmatpush3.msra.mxu0 %v228_v59 }
  0x3a   : > { %2706 = vmatpush3.msra.mxu1 %v233_v60  ;;  %2695 = vmatmul.mubr.msk.f32.vlgmr.msra.gmra.mrb[6].mxu0 %vm270_vm1, %v3262_v20 }
  0x3b   : > { %2708 = vmatmul.mubr.msk.f32.vlgmr.msra.gmra.mrb[6].mxu1 %vm270_vm1, %v3262_v20  ;;  %2916 = vmatprep.subr.bf16.mxu0 %v3125_v3 }
  0x3c   : > { %2918 = vmatpush3.bf16.msra.mxu0 %v2917_v61  ;;  %2720 = vmatprep.mubr.msk.f32.mxu0 %vm3126_vm0, %v3127_v11 }
  0x3d   : > { %2919 = vmatprep.subr.bf16.mxu0 %v3125_v3  ;;  %2922 = vmatprep.subr.bf16.mxu1 %v3125_v3 }
  0x3e   : > { %2733 = vmatprep.mubr.msk.f32.mxu1 %vm3126_vm0, %v3127_v11  ;;  %2924 = vmatpush3.bf16.msra.mxu1 %v2923_v6 }
  0x3f   : > { %2925 = vmatprep.subr.bf16.mxu1 %v3125_v3 }
  0x40   : > { %2921 = vmatpush3.bf16.msra.mxu0 %v2920_v0 }
  0x41   : > { %2718 = vmatprep.subr.mxu0 %v3127_v11 }
  0x42   : > { %2927 = vmatpush3.bf16.msra.mxu1 %v2926_v13 }
  0x43   : > { %2731 = vmatprep.subr.mxu1 %v3127_v11 }
  0x44   : > { %2719 = vmatpush3.msra.mxu0 %v238_v5 }
  0x45   : > { %2721 = vmatmul.mubr.msk.f32.vlgmr.msra.gmra.mrb[8].mxu0 %vm270_vm1, %v3262_v20  ;;  %2928 = vmatprep.subr.bf16.mxu0 %v3125_v3 }
  0x46   : > { %2930 = vmatpush3.bf16.msra.mxu0 %v2929_v8  ;;  %2746 = vmatprep.mubr.msk.f32.mxu0 %vm3126_vm0, %v3127_v11 }
  0x47   : > { %2931 = vmatprep.subr.bf16.mxu0 %v3125_v3  ;;  %2732 = vmatpush3.msra.mxu1 %v243_v18 }
  0x48   : > { %2934 = vmatprep.subr.bf16.mxu1 %v3125_v3  ;;  %2734 = vmatmul.mubr.msk.f32.vlgmr.msra.gmra.mrb[8].mxu1 %vm270_vm1, %v3262_v20 }
  0x49   : > { %2936 = vmatpush3.bf16.msra.mxu1 %v2935_v21  ;;  %2759 = vmatprep.mubr.msk.f32.mxu1 %vm3126_vm0, %v3127_v11 }
  0x4a   : > { %2933 = vmatpush3.bf16.msra.mxu0 %v2932_v15  ;;  %2937 = vmatprep.subr.bf16.mxu1 %v3125_v3 }
  0x4b   : > { %2744 = vmatprep.subr.mxu0 %v3127_v11 }
  0x4d   : > { %2939 = vmatpush3.bf16.msra.mxu1 %v2938_v24 }
  0x4e   : > { %2745 = vmatpush3.msra.mxu0 %v248_v19  ;;  %2757 = vmatprep.subr.mxu1 %v3127_v11 }
  0x4f   : > { %2747 = vmatmul.mubr.msk.f32.vlgmr.msra.gmra.mrb[10].mxu0 %vm270_vm1, %v3262_v20  ;;  %2762 = vmatprep.subr.mxu0 %v3127_v11 }
  0x50   : > { %2764 = vmatprep.mubr.msk.f32.mxu0 %vm3126_vm0, %v3127_v11 }
  0x51   : > { %2758 = vmatpush3.msra.mxu1 %v253_v25 }
  0x52   : > { %2760 = vmatmul.mubr.msk.f32.vlgmr.msra.gmra.mrb[10].mxu1 %vm270_vm1, %v3262_v20  ;;  %2777 = vmatprep.subr.mxu1 %v3127_v11 }
  0x53   : > { %2779 = vmatprep.mubr.msk.f32.mxu1 %vm3126_vm0, %v3127_v11 }
  0xed   : > { %v340_v26 = vpop.f32.mrb[0].mxu0 }
  0xee   : > { %v2618_v27 = vpop.f32.mrb[1].mxu0  ;;  %v410_v28 = vpop.f32.mrb[0].mxu1 }
  0xef   : > { %v2631_v29 = vpop.f32.mrb[1].mxu1 }
  0xf7   : > { %v480_v30 = vpop.f32.mrb[2].mxu0 }
  0xf8   : > { %v2644_v31 = vpop.f32.mrb[3].mxu0 }
  0xf9   : > { %v550_v32 = vpop.f32.mrb[2].mxu1 }
  0xfa   : > { %v2657_v33 = vpop.f32.mrb[3].mxu1 }
 0x102   : > { %v620_v34 = vpop.f32.mrb[4].mxu0 }
 0x103   : > { %v2670_v35 = vpop.f32.mrb[5].mxu0  ;;  %2763 = vmatpush3.xpose.msk.msra.mxu0 %vm1114_vm2, %v620_v34 }
 0x104   : > { %v690_v36 = vpop.f32.mrb[4].mxu1  ;;  %2767 = vmatprep.subr.mxu0 %v3127_v11 }
 0x105   : > { %v2683_v37 = vpop.f32.mrb[5].mxu1 }
 0x106   : > { %2765 = vmatmul.mubr.msk.f32.vlgmr.msra.gmra.mrb[12].mxu0 %vm1114_vm2, %v340_v26 }
 0x107   : > { %2768 = vmatpush3.xpose.msk.msra.mxu0 %vm1114_vm2, %v690_v36  ;;  %2769 = vmatprep.mubr.msk.f32.mxu0 %vm3126_vm0, %v3127_v11 }
 0x108   : > { %2772 = vmatprep.subr.mxu0 %v3127_v11 }
 0x10a   : > { %2770 = vmatmul.mubr.msk.f32.vlgmr.msra.gmra.mrb[14].mxu0 %vm1114_vm2, %v410_v28 }
 0x10b   : > { %2774 = vmatprep.mubr.msk.f32.mxu0 %vm3126_vm0, %v3127_v11 }
 0x10d   : > { %v760_v38 = vpop.f32.mrb[6].mxu0 }
 0x10e   : > { %v830_v39 = vpop.f32.mrb[6].mxu1  ;;  %2773 = vmatpush3.xpose.msk.msra.mxu0 %vm1114_vm2, %v760_v38  ;;  %v2696_v40 = vpop.f32.mrb[7].mxu0 }
 0x10f   : > { %2778 = vmatpush3.xpose.msk.msra.mxu1 %vm1114_vm2, %v830_v39  ;;  %v2709_v41 = vpop.f32.mrb[7].mxu1  ;;  %2782 = vmatprep.subr.mxu0 %v3127_v11 }
 0x110   : > { %2787 = vmatprep.subr.mxu1 %v3127_v11 }
 0x111   : > { %2775 = vmatmul.mubr.msk.f32.vlgmr.msra.gmra.mrb[16].mxu0 %vm1114_vm2, %v480_v30 }
 0x112   : > { %2780 = vmatmul.mubr.msk.f32.vlgmr.msra.gmra.mrb[12].mxu1 %vm1114_vm2, %v550_v32  ;;  %2784 = vmatprep.mubr.msk.f32.mxu0 %vm3126_vm0, %v3127_v11 }
 0x113   : > { %2789 = vmatprep.mubr.msk.f32.mxu1 %vm3126_vm0, %v3127_v11 }
 0x118   : > { %v900_v42 = vpop.f32.mrb[8].mxu0 }
 0x119   : > { %v2722_v43 = vpop.f32.mrb[9].mxu0  ;;  %2783 = vmatpush3.msra.mxu0 %v900_v42  ;;  %v254_v42 = vld [vmem:[%s3707_s1 + $0x1e0] sm:$0xff] }
 0x11a   : > { %2792 = vmatprep.subr.mxu0 %v3127_v11  ;;  %v255_v43 = vld [vmem:[%s3707_s1 + $0x1e8] sm:$0xff] }
 0x11b   : > { %v970_v45 = vpop.f32.mrb[8].mxu1 }
 0x11c   : > { %v2735_v47 = vpop.f32.mrb[9].mxu1  ;;  %2788 = vmatpush3.msra.mxu1 %v970_v45 }
 0x11d   : > { %2797 = vmatprep.subr.mxu1 %v3127_v11  ;;  %v2941_v47 = vpack.c.bf16 %v255_v43, %v254_v42  ;;  %v3645_v43 = vld [vmem:[%s3709_s3 + $0x1] ss:$0 sm:$0xff] }
 0x122   : > { %v3503_v44 = vpop.f32.mrb[10].mxu0 }
 0x123   : > { %v2748_v46 = vpop.f32.mrb[11].mxu0 }
 0x125   : > { %v3506_v48 = vpop.f32.mrb[10].mxu1 }
 0x126   : > { %v2761_v49 = vpop.f32.mrb[11].mxu1 }
 0x1d9   : > { %v1187_v50 = vpop.f32.mrb[12].mxu0 }
 0x1da   : > { %v1419_v51 = vmul.f32 0.35355338, %v1187_v50  ;;  %v2766_v52 = vpop.f32.mrb[13].mxu0 }
 0x1db   : > { %v259_v52 = vld [vmem:[%s3707_s1 + $0x210] sm:$0xff] }
 0x1dc   : > { %v1423_v53 = vsel %vm1114_vm2, %v1419_v51, -inf }
 0x1dd   : > { %1424 = vmax.xlane.f32.xlu0 %v1423_v53  ;;  %v1263_v54 = vpop.f32.mrb[14].mxu0 }
 0x1de   : > { %v1420_v55 = vmul.f32 0.35355338, %v1263_v54  ;;  %v2771_v56 = vpop.f32.mrb[15].mxu0 }
 0x1df   : > { %v256_v56 = vld [vmem:[%s3707_s1 + $0x1f0] sm:$0xff] }
 0x1e0   : > { %v1426_v57 = vsel %vm1114_vm2, %v1420_v55, -inf }
 0x1e1   : > { %1427 = vmax.xlane.f32.xlu0 %v1426_v57  ;;  %v257_v57 = vld [vmem:[%s3707_s1 + $0x1f8] sm:$0xff] }
 0x1e4   : > { %v1339_v58 = vpop.f32.mrb[16].mxu0 }
 0x1e5   : > { %v1421_v59 = vmul.f32 0.35355338, %v1339_v58  ;;  %v1415_v60 = vpop.f32.mrb[12].mxu1  ;;  %v2776_v61 = vpop.f32.mrb[17].mxu0  ;;  %v2945_v58 = vpack.c.bf16 %v257_v57, %v256_v56 }
 0x1e6   : > { %v2781_v62 = vpop.f32.mrb[13].mxu1  ;;  %v1422_v63 = vmul.f32 0.35355338, %v1415_v60  ;;  %v261_v60 = vld [vmem:[%s3707_s1 + $0x220] sm:$0xff] }
 0x1e7   : > { %v1429_v0 = vsel %vm1114_vm2, %v1421_v59, -inf  ;;  %v262_v62 = vld [vmem:[%s3707_s1 + $0x230] sm:$0xff] }
 0x1e8   : > { %1430 = vmax.xlane.f32.xlu1 %v1429_v0  ;;  %v1432_v1 = vsel %vm1114_vm2, %v1422_v63, -inf }
 0x1ec   : > { %1433 = vmax.xlane.f32.xlu1 %v1432_v1  ;;  %v266_v1 = vld [vmem:[%s3707_s1 + $0x258] sm:$0xff] }
 0x26a   : > { %v1425_v2 = vpop.xlane.xlu0 %1424 }
 0x26b   : > { %v1435_v4 = vsub.f32 %v1419_v51, %v1425_v2  ;;  %v258_v51 = vld [vmem:[%s3707_s1 + $0x208] sm:$0xff]  ;;  %v267_v2 = vld [vmem:[%s3707_s1 + $0x260] sm:$0xff] }
 0x26c   : > { %v2949_v54 = vpack.c.bf16 %v259_v52, %v258_v51 }
 0x26d   : > { %v1439_v5 = vmul.f32 1.442695, %v1435_v4 }
 0x26e   : > { %v1428_v6 = vpop.xlane.xlu0 %1427 }
 0x26f   : > { %3041 = vpow2.f32 %v1439_v5  ;;  %v1436_v7 = vsub.f32 %v1420_v55, %v1428_v6  ;;  %v2965_v6 = vpack.c.bf16 %v267_v2, %v266_v1 }
 0x271   : > { %v1441_v8 = vmul.f32 1.442695, %v1436_v7  ;;  %v264_v7 = vld [vmem:[%s3707_s1 + $0x240] sm:$0xff] }
 0x273   : > { %3043 = vpow2.f32 %v1441_v8  ;;  %v265_v8 = vld [vmem:[%s3707_s1 + $0x248] sm:$0xff] }
 0x275   : > { %v1431_v9 = vpop.xlane.xlu1 %1430 }
 0x276   : > { %v1437_v10 = vsub.f32 %v1421_v59, %v1431_v9  ;;  %v260_v59 = vld [vmem:[%s3707_s1 + $0x218] sm:$0xff] }
 0x277   : > { %v2953_v61 = vpack.c.bf16 %v261_v60, %v260_v59 }
 0x278   : > { %v1443_v12 = vmul.f32 1.442695, %v1437_v10 }
 0x279   : > { %v3042_v13 = vpop.eup %3041  ;;  %v1434_v14 = vpop.xlane.xlu1 %1433 }
 0x27a   : > { %3045 = vpow2.f32 %v1443_v12  ;;  %v1438_v15 = vsub.f32 %v1422_v63, %v1434_v14  ;;  %v1447_v16 = vsel %vm1114_vm2, %v3042_v13, 0.0  ;;  %v263_v63 = vld [vmem:[%s3707_s1 + $0x238] sm:$0xff]  ;;  %v2961_v12 = vpack.c.bf16 %v265_v8, %v264_v7  ;;  %v269_v14 = vld [vmem:[%s3707_s1 + $0x270] sm:$0xff] }
 0x27b   : > { %1448 = vadd.xlane.f32.xlu0 %v1447_v16  ;;  %v2957_v0 = vpack.c.bf16 %v263_v63, %v262_v62 }
 0x27c   : > { %v1445_v17 = vmul.f32 1.442695, %v1438_v15 }
 0x27d   : > { %v3044_v18 = vpop.eup %3043 }
 0x27e   : > { %3047 = vpow2.f32 %v1445_v17  ;;  %v1450_v19 = vsel %vm1114_vm2, %v3044_v18, 0.0 }
 0x27f   : > { %1451 = vadd.xlane.f32.xlu1 %v1450_v19 }
 0x284   : > { %v3046_v21 = vpop.eup %3045 }
 0x285   : > { %v1453_v22 = vsel %vm1114_vm2, %v3046_v21, 0.0 }
 0x286   : > { %1454 = vadd.xlane.f32.xlu0 %v1453_v22 }
 0x288   : > { %v3048_v23 = vpop.eup %3047 }
 0x289   : > { %v1456_v24 = vsel %vm1114_vm2, %v3048_v23, 0.0 }
 0x28a   : > { %1457 = vadd.xlane.f32.xlu1 %v1456_v24 }
 0x308   : > { %v1449_v25 = vpop.xlane.xlu0 %1448 }
 0x309   : > { %3049 = vrcp.f32 %v1449_v25 }
 0x30c   : > { %v1452_v26 = vpop.xlane.xlu1 %1451 }
 0x30d   : > { %3051 = vrcp.f32 %v1452_v26 }
 0x313   : > { %v3050_v27 = vpop.eup %3049  ;;  %v1455_v28 = vpop.xlane.xlu0 %1454 }
 0x314   : > { %v1463_v29 = vmul.f32 %v3050_v27, %v1449_v25  ;;  %3053 = vrcp.f32 %v1455_v28 }
 0x316   : > { %v1467_v30 = vsub.f32 2.0, %v1463_v29 }
 0x317   : > { %v3052_v31 = vpop.eup %3051  ;;  %v1458_v32 = vpop.xlane.xlu1 %1457 }
 0x318   : > { %v1471_v33 = vmul.f32 %v3050_v27, %v1467_v30  ;;  %v1464_v34 = vmul.f32 %v3052_v31, %v1452_v26  ;;  %3055 = vrcp.f32 %v1458_v32  ;;  %v2476_v30 = vld [vmem:[%s3709_s3] ss:$0 sm:$0xff] }
 0x31a   : > { %v1475_v35 = vmul.f32 %v3042_v13, %v1471_v33  ;;  %v1468_v36 = vsub.f32 2.0, %v1464_v34  ;;  %v268_v13 = vld [vmem:[%s3707_s1 + $0x268] sm:$0xff] }
 0x31b   : > { %v2969_v15 = vpack.c.bf16 %v269_v14, %v268_v13 }
 0x31c   : > { %v1472_v37 = vmul.f32 %v3052_v31, %v1468_v36  ;;  %2785 = vmatmul.mubr.msk.f32.vlgmr.msra.gmra.mrb[18].mxu0 %vm1114_vm2, %v1475_v35 }
 0x31d   : > { %2793 = vmatpush3.msra.mxu0 %v3503_v44  ;;  %2794 = vmatprep.mubr.msk.f32.mxu0 %vm3126_vm0, %v3127_v11 }
 0x31e   : > { %v3054_v38 = vpop.eup %3053  ;;  %v1476_v39 = vmul.f32 %v3044_v18, %v1472_v37  ;;  %2940 = vmatprep.subr.bf16.mxu0 %v3125_v3  ;;  %v2148_v37 = vld [vmem:[%s3708_s2] sm:$0xff] }
 0x31f   : > { %v1465_v40 = vmul.f32 %v3054_v38, %v1455_v28 }
 0x320   : > { %2790 = vmatmul.mubr.msk.f32.vlgmr.msra.gmra.mrb[14].mxu1 %vm1114_vm2, %v1476_v39  ;;  %v2150_v39 = vld [vmem:[%s3708_s2 + $0x10] sm:$0xff] }
 0x321   : > { %v1469_v41 = vsub.f32 2.0, %v1465_v40  ;;  %2798 = vmatpush3.msra.mxu1 %v3506_v48  ;;  %2799 = vmatprep.mubr.msk.f32.mxu1 %vm3126_vm0, %v3127_v11  ;;  %v2151_v40 = vld [vmem:[%s3708_s2 + $0x18] sm:$0xff] }
 0x322   : > { %v3056_v44 = vpop.eup %3055  ;;  %2948 = vmatprep.subr.bf16.mxu1 %v3125_v3 }
 0x323   : > { %v1473_v45 = vmul.f32 %v3054_v38, %v1469_v41  ;;  %v1466_v46 = vmul.f32 %v3056_v44, %v1458_v32  ;;  %v2976_v41 = vpack.c.bf16 %v2151_v40, %v2150_v39 }
 0x325   : > { %v1477_v49 = vmul.f32 %v3046_v21, %v1473_v45  ;;  %v1470_v50 = vsub.f32 2.0, %v1466_v46 }
 0x327   : > { %v1474_v53 = vmul.f32 %v3056_v44, %v1470_v50  ;;  %2795 = vmatmul.mubr.msk.f32.vlgmr.msra.gmra.mrb[20].mxu0 %vm1114_vm2, %v1477_v49  ;;  %v3036_v44 = vpack.i.bf16 %v2151_v40, %v2150_v39 }
 0x328   : > { %2943 = vmatpush3.bf16.xpose.msk.msra.mxu0 %vm3534_vm3, %v2941_v47  ;;  %2810 = vmatprep.mubr.msk.f32.mxu0 %vm3126_vm0, %v3127_v11 }
 0x329   : > { %v1478_v55 = vmul.f32 %v3048_v23, %v1474_v53  ;;  %2944 = vmatprep.subr.bf16.mxu0 %v3125_v3 }
 0x32b   : > { %2800 = vmatmul.mubr.msk.f32.vlgmr.msra.gmra.mrb[16].mxu1 %vm1114_vm2, %v1478_v55 }
 0x32c   : > { %2951 = vmatpush3.bf16.xpose.msk.msra.mxu1 %vm3534_vm3, %v2949_v54  ;;  %2821 = vmatprep.mubr.msk.f32.mxu1 %vm3126_vm0, %v3127_v11 }
 0x32d   : > { %2952 = vmatprep.subr.bf16.mxu1 %v3125_v3 }
 0x330   : > { %2947 = vmatpush3.bf16.xpose.msk.msra.mxu0 %vm3534_vm3, %v2945_v58 }
 0x331   : > { %2956 = vmatprep.subr.bf16.mxu0 %v3125_v3 }
 0x334   : > { %2955 = vmatpush3.bf16.xpose.msk.msra.mxu1 %vm3534_vm3, %v2953_v61 }
 0x335   : > { %2964 = vmatprep.subr.bf16.mxu1 %v3125_v3 }
 0x3ef   : > { %v1548_v4 = vpop.f32.mrb[18].mxu0 }
 0x3f0   : > { %v2786_v5 = vpop.f32.mrb[19].mxu0  ;;  %2811 = vmatmul.mubr.msk.f32.vlgmr.msra.gmra.mrb[22].mxu0 %vm1114_vm2, %v1548_v4 }
 0x3f1   : > { %2959 = vmatpush3.bf16.xpose.msk.msra.mxu0 %vm3534_vm3, %v2957_v0  ;;  %2832 = vmatprep.mubr.msk.f32.mxu0 %vm3126_vm0, %v3127_v11 }
 0x3f2   : > { %2960 = vmatprep.subr.bf16.mxu0 %v3125_v3 }
 0x3f3   : > { %v1621_v9 = vpop.f32.mrb[14].mxu1 }
 0x3f4   : > { %v2791_v10 = vpop.f32.mrb[15].mxu1  ;;  %2822 = vmatmul.mubr.msk.f32.vlgmr.msra.gmra.mrb[18].mxu1 %vm1114_vm2, %v1621_v9 }
 0x3f5   : > { %2967 = vmatpush3.bf16.xpose.msk.msra.mxu1 %vm3534_vm3, %v2965_v6  ;;  %2843 = vmatprep.mubr.msk.f32.mxu1 %vm3126_vm0, %v3127_v11 }
 0x3f6   : > { %2968 = vmatprep.subr.bf16.mxu1 %v3125_v3 }
 0x3f9   : > { %2963 = vmatpush3.bf16.xpose.msk.msra.mxu0 %vm3534_vm3, %v2961_v12 }
 0x3fa   : > { %v1694_v16 = vpop.f32.mrb[20].mxu0  ;;  %2972 = vmatprep.subr.bf16.mxu0 %v3125_v3 }
 0x3fb   : > { %v2796_v17 = vpop.f32.mrb[21].mxu0 }
 0x3fd   : > { %2971 = vmatpush3.bf16.xpose.msk.msra.mxu1 %vm3534_vm3, %v2969_v15 }
 0x3fe   : > { %v1767_v18 = vpop.f32.mrb[16].mxu1  ;;  %2978 = vmatprep.subr.bf16.mxu1 %v3125_v3 }
 0x3ff   : > { %v2801_v19 = vpop.f32.mrb[17].mxu1 }
 0x400   : > { %2833 = vmatmul.mubr.msk.f32.vlgmr.msra.gmra.mrb[24].mxu0 %vm1114_vm2, %v1694_v16 }
 0x401   : > { %2854 = vmatprep.mubr.msk.f32.mxu0 %vm3126_vm0, %v3127_v11 }
 0x404   : > { %2844 = vmatmul.mubr.msk.f32.vlgmr.msra.gmra.mrb[20].mxu1 %vm1114_vm2, %v1767_v18 }
 0x405   : > { %2865 = vmatprep.mubr.msk.f32.mxu1 %vm3126_vm0, %v3127_v11 }
 0x4c3   : > { %v1852_v21 = vpop.f32.mrb[22].mxu0 }
 0x4c4   : > { %v2812_v22 = vpop.f32.mrb[23].mxu0 }
 0x4c7   : > { %v1937_v23 = vpop.f32.mrb[18].mxu1 }
 0x4c8   : > { %v2111_v24 = vadd.f32 %v1937_v23, %v1852_v21  ;;  %v2823_v25 = vpop.f32.mrb[19].mxu1 }
 0x4d3   : > { %v2022_v26 = vpop.f32.mrb[24].mxu0 }
 0x4d4   : > { %v2112_v27 = vadd.f32 %v2111_v24, %v2022_v26  ;;  %v2834_v28 = vpop.f32.mrb[25].mxu0 }
 0x4d7   : > { %v2107_v29 = vpop.f32.mrb[20].mxu1 }
 0x4d8   : > { %v2113_v31 = vadd.f32 %v2112_v27, %v2107_v29  ;;  %v2845_v32 = vpop.f32.mrb[21].mxu1 }
 0x4da   : > { %v2120_v33 = vadd.f32 %v2476_v30, %v2113_v31 }
 0x4dc   : > { %v2121_v34 = vadd.f32 %v2120_v33, %v3262_v20  ;;  %v2149_v20 = vld [vmem:[%s3708_s2 + $0x8] sm:$0xff] }
 0x4dd   : > { %v2973_v38 = vpack.c.bf16 %v2149_v20, %v2148_v37  ;;  %v3031_v42 = vpack.i.bf16 %v2149_v20, %v2148_v37 }
 0x4de   : > { %v2123_v11 = vsel %vm2122_vm4, %v2121_v34, 0.0  ;;  %v2128_v35 = vmul.f32 %v2121_v34, %v2121_v34 }
 0x4df   : > { %2124 = vadd.xlane.f32.xlu0 %v2123_v11  ;;  %2974 = vmatpush3.bf16.msra.mxu0 %v2973_v38 }
 0x4e0   : > { %v2129_v36 = vsel %vm2122_vm4, %v2128_v35, 0.0  ;;  %2975 = vmatprep.subr.bf16.mxu0 %v3125_v3 }
 0x4e1   : > { %2130 = vadd.xlane.f32.xlu1 %v2129_v36 }
 0x4e3   : > { %2977 = vmatpush3.bf16.msra.mxu0 %v2976_v41 }
 0x4f2   : > { %2144 = vrot.lane.b32.xlu1 %v2476_v30, %s3128_s7 }
 0x4f5   : > { %2140 = vrot.lane.b32.xlu0 %v2476_v30, %s3129_s8 }
 0x4f6   : > { %3032 = vrot.lane.b32.xlu1 %v3031_v42, %s3128_s7 }
 0x4f9   : > { %2157 = vrot.lane.b32.xlu0 %v3645_v43, %s3128_s7 }
 0x4fa   : > { %3037 = vrot.lane.b32.xlu1 %v3036_v44, %s3128_s7  ;;  %s2367_s7 = sshll.u32 %s188_s30, 4  ;;  %s3665_s7 = int_to_ptr.vmem [resolvable:$true] %s2367_s7 }
 0x4fb   : > { %s3061_s12 = scalar_lea.vmem %s3665_s7, 128  ;;  %p3068_p0 = scmp.lt.s32.totalorder %s3665_s7, %s3066_s13 }
 0x4fc   : > { %p3062_p11 = scmp.ne.s32.totalorder %s3665_s7, %s3061_s12  ;;  %p3069_p1 = scmp.lt.s32.totalorder %s3067_s14, %s3061_s12 }
 0x4fe   : > { %2246 = vrot.lane.b32.xlu1 %v2476_v30, %s3130_s28  ;;  %p3063_p12 = pnand %p3062_p11, %p3195_p5  ;;  %p3070_p2 = por %p3069_p1, %p3068_p0 }
 0x500   : > { %p3064_p13 = pneg %p3063_p12 }
 0x502   : > { %p3071_p3 = pnand %p3070_p2, %p3064_p13 }
 0x56c   : > { %v2125_v45 = vpop.xlane.xlu0 %2124 }
 0x56d   : > { %v2127_v46 = vmul.f32 0.03125, %v2125_v45 }
 0x56e   : > { %v2131_v47 = vpop.xlane.xlu1 %2130 }
 0x56f   : > { %v2133_v49 = vmul.f32 %v2127_v46, %v2127_v46  ;;  %v2132_v50 = vmul.f32 0.03125, %v2131_v47  ;;  %v2135_v57 = vsub.f32 %v2121_v34, %v2127_v46 }
 0x570   : > { %v2141_v60 = vpop.permute.xlu0 %2140 }
 0x571   : > { %v2134_v48 = vsub.f32 %v2132_v50, %v2133_v49 }
 0x572   : > { %v2145_v52 = vpop.permute.xlu1 %2144 }
 0x573   : > { %v2136_v51 = vadd.f32 1e-05, %v2134_v48 }
 0x574   : > { %v2158_v4 = vpop.permute.xlu0 %2157 }
 0x575   : > { %3057 = vrsqrt.f32 %v2136_v51 }
 0x576   : > { %v3033_v53 = vpop.permute.xlu1 %3032 }
 0x577   : > { %v3035_v54 = vunpack.i.h.bf16 %v3033_v53  ;;  %v3034_v55 = vunpack.i.l.bf16 %v3033_v53 }
 0x579   : > { %v2979_v56 = vpack.c.bf16 %v3035_v54, %v3034_v55 }
 0x57a   : > { %v3038_v58 = vpop.permute.xlu1 %3037 }
 0x57b   : > { %2981 = vmatpush3.bf16.xpose.msk.msra.mxu1 %vm2980_vm6, %v2979_v56  ;;  %v3040_v61 = vunpack.i.h.bf16 %v3038_v58  ;;  %v3039_v62 = vunpack.i.l.bf16 %v3038_v58 }
 0x57c   : > { %2982 = vmatprep.subr.bf16.mxu1 %v3125_v3 }
 0x57d   : > { %v2983_v1 = vpack.c.bf16 %v3040_v61, %v3039_v62 }
 0x57e   : > { %v2247_v9 = vpop.permute.xlu1 %2246 }
 0x57f   : > { %v3058_v59 = vpop.eup %3057 }
 0x580   : > { %v2138_v63 = vmul.f32 %v3058_v59, %v2135_v57 }
 0x582   : > { %v2143_v0 = vmul.f32 %v2141_v60, %v2138_v63 }
 0x583   : > { %2985 = vmatpush3.bf16.xpose.msk.msra.mxu1 %vm2980_vm6, %v2983_v1 }
 0x584   : > { %v2147_v2 = vadd.f32 %v2145_v52, %v2143_v0 }
 0x586   : > { %2855 = vmatmul.mubr.msk.f32.vlgmr.msra.gmra.mrb[26].mxu0 %vm2122_vm4, %v2147_v2 }
 0x659   : > { %v2229_v5 = vpop.f32.mrb[26].mxu0 }
 0x65a   : > { %v2230_v6 = vadd.f32 %v2229_v5, %v2158_v4  ;;  %v2856_v7 = vpop.f32.mrb[27].mxu0 }
 0x65c   : > { %v2233_v8 = vmax.f32 %v2230_v6, 0.0 }
 0x65e   : > { %2866 = vmatmul.mubr.msk.f32.vlgmr.msra.gmra.mrb[22].mxu1 %vm2249_vm5, %v2233_v8 }
 0x731   : > { %v2327_v10 = vpop.f32.mrb[22].mxu1 }
 0x732   : > { %v2328_v12 = vadd.f32 %v2327_v10, %v2247_v9  ;;  %v2867_v13 = vpop.f32.mrb[23].mxu1 }
 0x734   : > { %v2331_v3 = vadd.f32 %v2328_v12, %v2147_v2 }
 0x736   : > { %v2332_v14 = vsel %vm2122_vm4, %v2331_v3, 0.0  ;;  %v2336_v15 = vmul.f32 %v2331_v3, %v2331_v3 }
 0x737   : > { %2333 = vadd.xlane.f32.xlu0 %v2332_v14 }
 0x738   : > { %v2337_v16 = vsel %vm2122_vm4, %v2336_v15, 0.0 }
 0x739   : > { %2338 = vadd.xlane.f32.xlu1 %v2337_v16 }
 0x74d   : > { %2348 = vrot.lane.b32.xlu0 %v3645_v43, %s3129_s8 }
 0x7c4   : > { %v2334_v17 = vpop.xlane.xlu0 %2333 }
 0x7c5   : > { %v2335_v18 = vmul.f32 0.03125, %v2334_v17 }
 0x7c6   : > { %v2339_v19 = vpop.xlane.xlu1 %2338 }
 0x7c7   : > { %v2341_v21 = vmul.f32 %v2335_v18, %v2335_v18  ;;  %v2340_v22 = vmul.f32 0.03125, %v2339_v19  ;;  %v2343_v25 = vsub.f32 %v2331_v3, %v2335_v18 }
 0x7c8   : > { %v2349_v28 = vpop.permute.xlu0 %2348 }
 0x7c9   : > { %v2342_v23 = vsub.f32 %v2340_v22, %v2341_v21 }
 0x7cb   : > { %v2344_v24 = vadd.f32 1e-05, %v2342_v23 }
 0x7cd   : > { %3059 = vrsqrt.f32 %v2344_v24 }
 0x7d7   : > { %v3060_v26 = vpop.eup %3059 }
 0x7d8   : > { %v2346_v27 = vmul.f32 %v3060_v26, %v2343_v25 }
 0x7da   : > { %v2347_v29 = vmul.f32 %v3645_v43, %v2346_v27 }
 0x7dc   : > { %v2351_v30 = vadd.f32 %v2349_v28, %v2347_v29 }
 0x7de   : > { %2352 = vst.msk [vmem:[%s188_s30] sm:$0xff] %vm2122_vm4, %v2351_v30 }
 0x7df   : > { %3074 = shalt.err (!%p3071_p3)
}
 0x7e0   : > { %s3075_s20 = scalar_lea.hbm %s3663_s10, 128  ;;  %s3079_s27 = scalar_lea.hbm %s3710_s4, 256 }
 0x7e1   : > { %p3076_p4 = scmp.ne.s32.totalorder %s3663_s10, %s3075_s20  ;;  %p3080_p9 = scmp.lt.u32.totalorder %s3663_s10, %s3710_s4 }
 0x7e2   : > { %p3081_p10 = scmp.lt.u32.totalorder %s3079_s27, %s3075_s20  ;;  %p3083_p12 = scmp.lt.u32.totalorder %s3075_s20, %s3663_s10 }
 0x7e3   : > { %p3077_p7 = pnand %p3076_p4, %p3195_p5 }
 0x7e4   : > { %p3082_p11 = por %p3081_p10, %p3080_p9 }
 0x7e5   : > { %p3078_p8 = pneg %p3077_p7 }
 0x7e6   : > { %p3084_p13 = por %p3083_p12, %p3082_p11 }
 0x7e8   : > { %p3085_p0 = pnand %p3084_p13, %p3078_p8 }
 0x7ea   : > { %3088 = shalt.err (!%p3085_p0)
}
 0x7eb   : > { %2986 = dma.vmem_to_hbm [thread:$0]  (%p3195_p5), %s3665_s7, 128, %s3663_s10, %s2354_s11  }
 0x7ec PF: > { %p2992_p1 = scmp.ge.s32.totalorder %s3123_s18, 2  ;;  %s2379_s5 = sand.u32 1, %s3111_s15  }
 0x7ed   : > { %s2380_s6 = scalar_lea.sflag [#allocation3], %s2379_s5 }
 0x7ee   : > { %p2989_p2 = pnand %p2992_p1, %p3199_p6 }
 0x7f0   : > { %3106 = dma.done.wait (!%p2989_p2), %s2380_s6, 128  }
 0x7f1   : > { %3108 = vsyncadd (!%p2989_p2), %s2380_s6, 4294967168  ;;  %p14_p3 = scmp.ge.s32.totalorder %s3182_s21, 4   ;;  %s3715_s15 = smov %s3115_s16 }
 0x7f2   : > { %s3716_s16 = smov %s3119_s17  ;;  %s3717_s17 = smov %s3193_s24 }
 0x7f3   : > { %s3718_s18 = smov %s3182_s21  ;;  %16 = sbr.rel (!%p14_p3) target bundleno = 3 (0x3), region = 71 }
 0x7fa   :  { %2385 = vsyncpa [#allocation3], 1 }
 0x7fb   :  { %2387 = vsyncpa [#allocation3 + $0x1], 1 }

</bundles_post_ra>
